<compile_context>
chip_gen: v7x
topology: tpu7x:2x2x1
jax: 0.10.0
libtpu: 0.0.40
codegen_flags: <defaults>
</compile_context>

<pallas_src>
import functools

import jax
import jax.numpy as jnp
from jax.experimental import pallas as pl
from jax.experimental.pallas import tpu as pltpu


Z_PAD = 128   # bottleneck width (8) zero-padded to one full lane width
TM_TARGET = 512  # target rows per grid step for real batches


# ----------------------------- Pallas kernel --------------------------------

def _aenet_fused_kernel(x_ref, *refs):
    """Full AENet forward for one (tm, input_dim) row tile.

    refs = (w1, b1, w2, b2, ..., w10, b10, recon_ref, z_ref)
    BN is pre-folded. Each layer: bf16 MXU matmul (f32 accumulation) + f32 bias
    add + ReLU, re-cast to bf16 for the next matmul. All intermediates stay in
    vregs/VMEM.
    """
    recon_ref, z_ref = refs[-2], refs[-1]
    p = refs[:-2]  # 20 param refs (bf16 weights, f32 biases)

    def layer(h, w_ref, b_ref, relu):
        y = jnp.dot(h, w_ref[...], preferred_element_type=jnp.float32)
        y = y + b_ref[...]
        if relu:
            y = jnp.maximum(y, 0.0)
        return y

    h = x_ref[...]  # bf16 (tm, input_dim)

    # encoder: 5 x (Linear + folded-BN + ReLU); layer-5 output lane-padded 8 -> 128
    for li in range(5):
        h = layer(h, p[2 * li], p[2 * li + 1], relu=True).astype(jnp.bfloat16)
    z_ref[...] = h  # bf16 padded bottleneck; columns 8..127 are exactly zero

    # decoder: 4 x (Linear + folded-BN + ReLU) + final Linear (no BN, no ReLU)
    d = h
    for li in range(5, 9):
        d = layer(d, p[2 * li], p[2 * li + 1], relu=True).astype(jnp.bfloat16)
    recon_ref[...] = layer(d, p[18], p[19], relu=False)  # f32 output


def _round_up(v, m):
    return ((v + m - 1) // m) * m


@functools.partial(jax.jit, static_argnames=("input_dim",))
def aenet_forward(x, weights, biases, *, input_dim):
    """x: any shape with prod = M*input_dim -> (recon (M, input_dim) f32, z (M, 8) f32)."""
    h = x.reshape(-1, input_dim).astype(jnp.bfloat16)
    M = h.shape[0]

    # Adaptive row tiling:
    #   * target ~TM_TARGET rows per grid step (amortizes per-step overhead),
    #   * force >= 2 grid steps whenever M > 8 so both v7x TensorCores get work,
    #   * pick tm as a multiple of 8 near M/grid to minimize padded-row waste.
    M8 = _round_up(max(M, 8), 8)
    if M8 <= 8:
        grid_rows, tm = 1, 8
    else:
        grid_rows = max(2, pl.cdiv(M8, TM_TARGET))
        tm = _round_up(pl.cdiv(M8, grid_rows), 8)
    M_pad = tm * grid_rows
    if M_pad != M:
        h = jnp.pad(h, ((0, M_pad - M), (0, 0)))

    flat_params = []
    in_specs = [pl.BlockSpec((tm, input_dim), lambda i: (i, 0))]  # activation tile
    for w, b in zip(weights, biases):
        flat_params += [w, b]
        # Weights / biases: full array resident in VMEM, constant block index
        # (never re-DMA'd across the grid).
        in_specs.append(pl.BlockSpec(w.shape, lambda i: (0, 0)))
        in_specs.append(pl.BlockSpec(b.shape, lambda i: (0, 0)))

    recon_pad, z_pad = pl.pallas_call(
        _aenet_fused_kernel,
        out_shape=(
            jax.ShapeDtypeStruct((M_pad, input_dim), jnp.float32),
            jax.ShapeDtypeStruct((M_pad, Z_PAD), jnp.bfloat16),
        ),
        grid_spec=pltpu.PrefetchScalarGridSpec(
            num_scalar_prefetch=0,
            grid=(grid_rows,),
            in_specs=in_specs,
            out_specs=[
                pl.BlockSpec((tm, input_dim), lambda i: (i, 0)),
                pl.BlockSpec((tm, Z_PAD), lambda i: (i, 0)),
            ],
        ),
        compiler_params=pltpu.CompilerParams(
            dimension_semantics=("parallel",),
        ),
    )(h, *flat_params)

    recon = recon_pad[:M]
    z = z_pad[:M, :8].astype(jnp.float32)
    return recon, z


# -------------------------- parameter construction --------------------------

def _init_linear(key, fan_in, fan_out):
    """PyTorch nn.Linear default init (U(-1/sqrt(fan_in), 1/sqrt(fan_in)))."""
    k_w, k_b = jax.random.split(key)
    bound = 1.0 / jnp.sqrt(jnp.float32(fan_in))
    # stored transposed: (in, out), so the kernel computes x @ W
    w = jax.random.uniform(k_w, (fan_in, fan_out), jnp.float32, -bound, bound)
    b = jax.random.uniform(k_b, (fan_out,), jnp.float32, -bound, bound)
    return w, b


class AENetPallas:
    # encoder: input_dim->128->128->128->128->8  (Linear+BN+ReLU each)
    # decoder: 8->128->128->128->128 (Linear+BN+ReLU), then Linear(128->input_dim)
    def __init__(self, input_dim, block_size, key, eps=0.001):
        self.input_dim = input_dim
        self.block_size = block_size
        # unused-in-forward buffers, kept for shape fidelity
        self.cov_source = jnp.zeros((block_size, block_size), jnp.float32)
        self.cov_target = jnp.zeros((block_size, block_size), jnp.float32)

        dims = [
            (input_dim, 128), (128, 128), (128, 128), (128, 128), (128, 8),   # enc
            (8, 128), (128, 128), (128, 128), (128, 128), (128, input_dim),   # dec
        ]
        # Inference-mode BN fold (gamma=1, beta=0, mean=0, var=1):
        #   y = (xW + b) / sqrt(1+eps)  ->  W' = W*s, b' = b*s
        # NOTE: padded bottleneck positions (enc-L5 out cols 8..127, dec-L1 in
        # rows 8..127) must stay exactly zero for the padding scheme to be valid.
        s = 1.0 / jnp.sqrt(jnp.float32(1.0 + eps))

        keys = jax.random.split(key, len(dims))
        self.weights, self.biases = [], []
        for idx, (fi, fo) in enumerate(dims):
            w, b = _init_linear(keys[idx], fi, fo)
            if idx != 9:  # every layer except the final decoder Linear has BN
                w = w * s
                b = b * s
            if idx == 4:  # encoder layer 5: pad output dim 8 -> Z_PAD (zeros)
                w = jnp.pad(w, ((0, 0), (0, Z_PAD - 8)))
                b = jnp.pad(b, (0, Z_PAD - 8))
            if idx == 5:  # decoder layer 1: pad input dim 8 -> Z_PAD (zero rows)
                w = jnp.pad(w, ((0, Z_PAD - 8), (0, 0)))
            # bf16 weights (native MXU dtype); f32 biases (added after f32 acc).
            self.weights.append(w.astype(jnp.bfloat16))
            self.biases.append(b.reshape(1, -1).astype(jnp.float32))

    def __call__(self, x):
        return aenet_forward(x, self.weights, self.biases, input_dim=self.input_dim)

    # Pure-JAX reference of the same folded-BN, bf16-compute forward.
    def reference(self, x):
        h = x.reshape(-1, self.input_dim).astype(jnp.bfloat16)
        z = None
        for idx in range(10):
            w, b = self.weights[idx], self.biases[idx]
            y = jnp.dot(h, w, preferred_element_type=jnp.float32) + b
            if idx != 9:
                y = jnp.maximum(y, 0.0)
                h = y.astype(jnp.bfloat16)
            else:
                h = y
            if idx == 4:
                z = h[:, :8].astype(jnp.float32)
        return h, z


# ---------------------------------- main -------------------------------------

if __name__ == "__main__":
    key = jax.random.PRNGKey(0)
    k_param, k_x1, k_x2 = jax.random.split(key, 3)

    input_dim = 256    # 2*4*16*16 / 256 = 8 flattened rows
    block_size = 16    # cov_source / cov_target shape (unused in forward)

    model = AENetPallas(input_dim, block_size, k_param)

    # Case 1: tiny batch (single degenerate tile), matches the module's view(-1, input_dim).
    x1 = jax.random.normal(k_x1, (2, 4, 16, 16), jnp.float32)
    recon1, z1 = model(x1)
    recon1 = jax.block_until_ready(recon1)
    z1 = jax.block_until_ready(z1)
    assert recon1.shape == (8, input_dim), recon1.shape
    assert z1.shape == (8, 8), z1.shape
    assert recon1.dtype == jnp.float32 and z1.dtype == jnp.float32

    r_ref, z_ref = model.reference(x1)
    assert jnp.allclose(recon1, r_ref, atol=2e-2, rtol=2e-2), (
        float(jnp.max(jnp.abs(recon1 - r_ref))))
    assert jnp.allclose(z1, z_ref, atol=2e-2, rtol=2e-2), (
        float(jnp.max(jnp.abs(z1 - z_ref))))

    # Case 2: awkward mid-size batch (300 rows) exercising the adaptive tiling
    # (grid of 2 parallel steps, tm=152, minimal row padding).
    x2 = jax.random.normal(k_x2, (300, input_dim), jnp.float32)
    recon2, z2 = model(x2)
    recon2 = jax.block_until_ready(recon2)
    z2 = jax.block_until_ready(z2)
    assert recon2.shape == (300, input_dim), recon2.shape
    assert z2.shape == (300, 8), z2.shape

    r_ref2, z_ref2 = model.reference(x2)
    assert jnp.allclose(recon2, r_ref2, atol=2e-2, rtol=2e-2), (
        float(jnp.max(jnp.abs(recon2 - r_ref2))))
    assert jnp.allclose(z2, z_ref2, atol=2e-2, rtol=2e-2), (
        float(jnp.max(jnp.abs(z2 - z_ref2))))

    print("KERNEL_OK")
</pallas_src>

<mosaic_0001>
module attributes {stable_mosaic.version = 11 : i64} {
  func.func @_aenet_fused_kernel(%arg0: i32, %arg1: memref<8x256xbf16, #tpu.memory_space<vmem>>, %arg2: memref<256x128xbf16, #tpu.memory_space<vmem>>, %arg3: memref<1x128xf32, #tpu.memory_space<vmem>>, %arg4: memref<128x128xbf16, #tpu.memory_space<vmem>>, %arg5: memref<1x128xf32, #tpu.memory_space<vmem>>, %arg6: memref<128x128xbf16, #tpu.memory_space<vmem>>, %arg7: memref<1x128xf32, #tpu.memory_space<vmem>>, %arg8: memref<128x128xbf16, #tpu.memory_space<vmem>>, %arg9: memref<1x128xf32, #tpu.memory_space<vmem>>, %arg10: memref<128x128xbf16, #tpu.memory_space<vmem>>, %arg11: memref<1x128xf32, #tpu.memory_space<vmem>>, %arg12: memref<128x128xbf16, #tpu.memory_space<vmem>>, %arg13: memref<1x128xf32, #tpu.memory_space<vmem>>, %arg14: memref<128x128xbf16, #tpu.memory_space<vmem>>, %arg15: memref<1x128xf32, #tpu.memory_space<vmem>>, %arg16: memref<128x128xbf16, #tpu.memory_space<vmem>>, %arg17: memref<1x128xf32, #tpu.memory_space<vmem>>, %arg18: memref<128x128xbf16, #tpu.memory_space<vmem>>, %arg19: memref<1x128xf32, #tpu.memory_space<vmem>>, %arg20: memref<128x256xbf16, #tpu.memory_space<vmem>>, %arg21: memref<1x256xf32, #tpu.memory_space<vmem>>, %arg22: memref<8x256xf32, #tpu.memory_space<vmem>>, %arg23: memref<8x128xbf16, #tpu.memory_space<vmem>>) attributes {dimension_semantics = [#tpu.dimension_semantics<parallel>], iteration_bounds = array<i64: 1>, scalar_prefetch = 0 : i64, scratch_operands = 0 : i64, tpu.core_type = #tpu.core_type<tc>, window_params = [{transform_indices = @transform_0, window_bounds = array<i64: 8, 256>}, {pipeline_mode = #tpu.pipeline_mode<synchronous>, transform_indices = @transform_1, window_bounds = array<i64: 256, 128>}, {pipeline_mode = #tpu.pipeline_mode<synchronous>, transform_indices = @transform_2, window_bounds = array<i64: 1, 128>}, {pipeline_mode = #tpu.pipeline_mode<synchronous>, transform_indices = @transform_3, window_bounds = array<i64: 128, 128>}, {pipeline_mode = #tpu.pipeline_mode<synchronous>, transform_indices = @transform_4, window_bounds = array<i64: 1, 128>}, {pipeline_mode = #tpu.pipeline_mode<synchronous>, transform_indices = @transform_5, window_bounds = array<i64: 128, 128>}, {pipeline_mode = #tpu.pipeline_mode<synchronous>, transform_indices = @transform_6, window_bounds = array<i64: 1, 128>}, {pipeline_mode = #tpu.pipeline_mode<synchronous>, transform_indices = @transform_7, window_bounds = array<i64: 128, 128>}, {pipeline_mode = #tpu.pipeline_mode<synchronous>, transform_indices = @transform_8, window_bounds = array<i64: 1, 128>}, {pipeline_mode = #tpu.pipeline_mode<synchronous>, transform_indices = @transform_9, window_bounds = array<i64: 128, 128>}, {pipeline_mode = #tpu.pipeline_mode<synchronous>, transform_indices = @transform_10, window_bounds = array<i64: 1, 128>}, {pipeline_mode = #tpu.pipeline_mode<synchronous>, transform_indices = @transform_11, window_bounds = array<i64: 128, 128>}, {pipeline_mode = #tpu.pipeline_mode<synchronous>, transform_indices = @transform_12, window_bounds = array<i64: 1, 128>}, {pipeline_mode = #tpu.pipeline_mode<synchronous>, transform_indices = @transform_13, window_bounds = array<i64: 128, 128>}, {pipeline_mode = #tpu.pipeline_mode<synchronous>, transform_indices = @transform_14, window_bounds = array<i64: 1, 128>}, {pipeline_mode = #tpu.pipeline_mode<synchronous>, transform_indices = @transform_15, window_bounds = array<i64: 128, 128>}, {pipeline_mode = #tpu.pipeline_mode<synchronous>, transform_indices = @transform_16, window_bounds = array<i64: 1, 128>}, {pipeline_mode = #tpu.pipeline_mode<synchronous>, transform_indices = @transform_17, window_bounds = array<i64: 128, 128>}, {pipeline_mode = #tpu.pipeline_mode<synchronous>, transform_indices = @transform_18, window_bounds = array<i64: 1, 128>}, {pipeline_mode = #tpu.pipeline_mode<synchronous>, transform_indices = @transform_19, window_bounds = array<i64: 128, 256>}, {pipeline_mode = #tpu.pipeline_mode<synchronous>, transform_indices = @transform_20, window_bounds = array<i64: 1, 256>}, {transform_indices = @transform_21, window_bounds = array<i64: 8, 256>}, {transform_indices = @transform_22, window_bounds = array<i64: 8, 128>}]} {
    %c0 = arith.constant 0 : index
    %c0_0 = arith.constant 0 : index
    %0 = vector.load %arg1[%c0, %c0_0] : memref<8x256xbf16, #tpu.memory_space<vmem>>, vector<8x256xbf16>
    %c0_1 = arith.constant 0 : index
    %c0_2 = arith.constant 0 : index
    %1 = vector.load %arg2[%c0_1, %c0_2] : memref<256x128xbf16, #tpu.memory_space<vmem>>, vector<256x128xbf16>
    %cst = arith.constant dense<0.000000e+00> : vector<8x128xf32>
    %2 = tpu.matmul %0, %1, %cst {dimension_numbers = #tpu.dot_dimension_numbers<[1], [0], [0], [1], [0, 0, 1, 1], [], []>} : vector<8x256xbf16>, vector<256x128xbf16>, vector<8x128xf32> -> vector<8x128xf32>
    %c0_3 = arith.constant 0 : index
    %c0_4 = arith.constant 0 : index
    %3 = vector.load %arg3[%c0_3, %c0_4] : memref<1x128xf32, #tpu.memory_space<vmem>>, vector<1x128xf32>
    %4 = vector.broadcast %3 : vector<1x128xf32> to vector<8x128xf32>
    %5 = arith.addf %2, %4 : vector<8x128xf32>
    %cst_5 = arith.constant 0.000000e+00 : f32
    %6 = vector.broadcast %cst_5 : f32 to vector<8x128xf32>
    %7 = arith.maximumf %5, %6 : vector<8x128xf32>
    %8 = arith.truncf %7 : vector<8x128xf32> to vector<8x128xbf16>
    %c0_6 = arith.constant 0 : index
    %c0_7 = arith.constant 0 : index
    %9 = vector.load %arg4[%c0_6, %c0_7] : memref<128x128xbf16, #tpu.memory_space<vmem>>, vector<128x128xbf16>
    %cst_8 = arith.constant dense<0.000000e+00> : vector<8x128xf32>
    %10 = tpu.matmul %8, %9, %cst_8 {dimension_numbers = #tpu.dot_dimension_numbers<[1], [0], [0], [1], [0, 0, 1, 1], [], []>} : vector<8x128xbf16>, vector<128x128xbf16>, vector<8x128xf32> -> vector<8x128xf32>
    %c0_9 = arith.constant 0 : index
    %c0_10 = arith.constant 0 : index
    %11 = vector.load %arg5[%c0_9, %c0_10] : memref<1x128xf32, #tpu.memory_space<vmem>>, vector<1x128xf32>
    %12 = vector.broadcast %11 : vector<1x128xf32> to vector<8x128xf32>
    %13 = arith.addf %10, %12 : vector<8x128xf32>
    %cst_11 = arith.constant 0.000000e+00 : f32
    %14 = vector.broadcast %cst_11 : f32 to vector<8x128xf32>
    %15 = arith.maximumf %13, %14 : vector<8x128xf32>
    %16 = arith.truncf %15 : vector<8x128xf32> to vector<8x128xbf16>
    %c0_12 = arith.constant 0 : index
    %c0_13 = arith.constant 0 : index
    %17 = vector.load %arg6[%c0_12, %c0_13] : memref<128x128xbf16, #tpu.memory_space<vmem>>, vector<128x128xbf16>
    %cst_14 = arith.constant dense<0.000000e+00> : vector<8x128xf32>
    %18 = tpu.matmul %16, %17, %cst_14 {dimension_numbers = #tpu.dot_dimension_numbers<[1], [0], [0], [1], [0, 0, 1, 1], [], []>} : vector<8x128xbf16>, vector<128x128xbf16>, vector<8x128xf32> -> vector<8x128xf32>
    %c0_15 = arith.constant 0 : index
    %c0_16 = arith.constant 0 : index
    %19 = vector.load %arg7[%c0_15, %c0_16] : memref<1x128xf32, #tpu.memory_space<vmem>>, vector<1x128xf32>
    %20 = vector.broadcast %19 : vector<1x128xf32> to vector<8x128xf32>
    %21 = arith.addf %18, %20 : vector<8x128xf32>
    %cst_17 = arith.constant 0.000000e+00 : f32
    %22 = vector.broadcast %cst_17 : f32 to vector<8x128xf32>
    %23 = arith.maximumf %21, %22 : vector<8x128xf32>
    %24 = arith.truncf %23 : vector<8x128xf32> to vector<8x128xbf16>
    %c0_18 = arith.constant 0 : index
    %c0_19 = arith.constant 0 : index
    %25 = vector.load %arg8[%c0_18, %c0_19] : memref<128x128xbf16, #tpu.memory_space<vmem>>, vector<128x128xbf16>
    %cst_20 = arith.constant dense<0.000000e+00> : vector<8x128xf32>
    %26 = tpu.matmul %24, %25, %cst_20 {dimension_numbers = #tpu.dot_dimension_numbers<[1], [0], [0], [1], [0, 0, 1, 1], [], []>} : vector<8x128xbf16>, vector<128x128xbf16>, vector<8x128xf32> -> vector<8x128xf32>
    %c0_21 = arith.constant 0 : index
    %c0_22 = arith.constant 0 : index
    %27 = vector.load %arg9[%c0_21, %c0_22] : memref<1x128xf32, #tpu.memory_space<vmem>>, vector<1x128xf32>
    %28 = vector.broadcast %27 : vector<1x128xf32> to vector<8x128xf32>
    %29 = arith.addf %26, %28 : vector<8x128xf32>
    %cst_23 = arith.constant 0.000000e+00 : f32
    %30 = vector.broadcast %cst_23 : f32 to vector<8x128xf32>
    %31 = arith.maximumf %29, %30 : vector<8x128xf32>
    %32 = arith.truncf %31 : vector<8x128xf32> to vector<8x128xbf16>
    %c0_24 = arith.constant 0 : index
    %c0_25 = arith.constant 0 : index
    %33 = vector.load %arg10[%c0_24, %c0_25] : memref<128x128xbf16, #tpu.memory_space<vmem>>, vector<128x128xbf16>
    %cst_26 = arith.constant dense<0.000000e+00> : vector<8x128xf32>
    %34 = tpu.matmul %32, %33, %cst_26 {dimension_numbers = #tpu.dot_dimension_numbers<[1], [0], [0], [1], [0, 0, 1, 1], [], []>} : vector<8x128xbf16>, vector<128x128xbf16>, vector<8x128xf32> -> vector<8x128xf32>
    %c0_27 = arith.constant 0 : index
    %c0_28 = arith.constant 0 : index
    %35 = vector.load %arg11[%c0_27, %c0_28] : memref<1x128xf32, #tpu.memory_space<vmem>>, vector<1x128xf32>
    %36 = vector.broadcast %35 : vector<1x128xf32> to vector<8x128xf32>
    %37 = arith.addf %34, %36 : vector<8x128xf32>
    %cst_29 = arith.constant 0.000000e+00 : f32
    %38 = vector.broadcast %cst_29 : f32 to vector<8x128xf32>
    %39 = arith.maximumf %37, %38 : vector<8x128xf32>
    %40 = arith.truncf %39 : vector<8x128xf32> to vector<8x128xbf16>
    %c0_30 = arith.constant 0 : index
    %c0_31 = arith.constant 0 : index
    %41 = vector.load %arg23[%c0_30, %c0_31] : memref<8x128xbf16, #tpu.memory_space<vmem>>, vector<8x128xbf16>
    tpu.vector_store %arg23[%c0_30, %c0_31], %40 {strides = array<i32>} : memref<8x128xbf16, #tpu.memory_space<vmem>>, vector<8x128xbf16>,
    %c0_32 = arith.constant 0 : index
    %c0_33 = arith.constant 0 : index
    %42 = vector.load %arg12[%c0_32, %c0_33] : memref<128x128xbf16, #tpu.memory_space<vmem>>, vector<128x128xbf16>
    %cst_34 = arith.constant dense<0.000000e+00> : vector<8x128xf32>
    %43 = tpu.matmul %40, %42, %cst_34 {dimension_numbers = #tpu.dot_dimension_numbers<[1], [0], [0], [1], [0, 0, 1, 1], [], []>} : vector<8x128xbf16>, vector<128x128xbf16>, vector<8x128xf32> -> vector<8x128xf32>
    %c0_35 = arith.constant 0 : index
    %c0_36 = arith.constant 0 : index
    %44 = vector.load %arg13[%c0_35, %c0_36] : memref<1x128xf32, #tpu.memory_space<vmem>>, vector<1x128xf32>
    %45 = vector.broadcast %44 : vector<1x128xf32> to vector<8x128xf32>
    %46 = arith.addf %43, %45 : vector<8x128xf32>
    %cst_37 = arith.constant 0.000000e+00 : f32
    %47 = vector.broadcast %cst_37 : f32 to vector<8x128xf32>
    %48 = arith.maximumf %46, %47 : vector<8x128xf32>
    %49 = arith.truncf %48 : vector<8x128xf32> to vector<8x128xbf16>
    %c0_38 = arith.constant 0 : index
    %c0_39 = arith.constant 0 : index
    %50 = vector.load %arg14[%c0_38, %c0_39] : memref<128x128xbf16, #tpu.memory_space<vmem>>, vector<128x128xbf16>
    %cst_40 = arith.constant dense<0.000000e+00> : vector<8x128xf32>
    %51 = tpu.matmul %49, %50, %cst_40 {dimension_numbers = #tpu.dot_dimension_numbers<[1], [0], [0], [1], [0, 0, 1, 1], [], []>} : vector<8x128xbf16>, vector<128x128xbf16>, vector<8x128xf32> -> vector<8x128xf32>
    %c0_41 = arith.constant 0 : index
    %c0_42 = arith.constant 0 : index
    %52 = vector.load %arg15[%c0_41, %c0_42] : memref<1x128xf32, #tpu.memory_space<vmem>>, vector<1x128xf32>
    %53 = vector.broadcast %52 : vector<1x128xf32> to vector<8x128xf32>
    %54 = arith.addf %51, %53 : vector<8x128xf32>
    %cst_43 = arith.constant 0.000000e+00 : f32
    %55 = vector.broadcast %cst_43 : f32 to vector<8x128xf32>
    %56 = arith.maximumf %54, %55 : vector<8x128xf32>
    %57 = arith.truncf %56 : vector<8x128xf32> to vector<8x128xbf16>
    %c0_44 = arith.constant 0 : index
    %c0_45 = arith.constant 0 : index
    %58 = vector.load %arg16[%c0_44, %c0_45] : memref<128x128xbf16, #tpu.memory_space<vmem>>, vector<128x128xbf16>
    %cst_46 = arith.constant dense<0.000000e+00> : vector<8x128xf32>
    %59 = tpu.matmul %57, %58, %cst_46 {dimension_numbers = #tpu.dot_dimension_numbers<[1], [0], [0], [1], [0, 0, 1, 1], [], []>} : vector<8x128xbf16>, vector<128x128xbf16>, vector<8x128xf32> -> vector<8x128xf32>
    %c0_47 = arith.constant 0 : index
    %c0_48 = arith.constant 0 : index
    %60 = vector.load %arg17[%c0_47, %c0_48] : memref<1x128xf32, #tpu.memory_space<vmem>>, vector<1x128xf32>
    %61 = vector.broadcast %60 : vector<1x128xf32> to vector<8x128xf32>
    %62 = arith.addf %59, %61 : vector<8x128xf32>
    %cst_49 = arith.constant 0.000000e+00 : f32
    %63 = vector.broadcast %cst_49 : f32 to vector<8x128xf32>
    %64 = arith.maximumf %62, %63 : vector<8x128xf32>
    %65 = arith.truncf %64 : vector<8x128xf32> to vector<8x128xbf16>
    %c0_50 = arith.constant 0 : index
    %c0_51 = arith.constant 0 : index
    %66 = vector.load %arg18[%c0_50, %c0_51] : memref<128x128xbf16, #tpu.memory_space<vmem>>, vector<128x128xbf16>
    %cst_52 = arith.constant dense<0.000000e+00> : vector<8x128xf32>
    %67 = tpu.matmul %65, %66, %cst_52 {dimension_numbers = #tpu.dot_dimension_numbers<[1], [0], [0], [1], [0, 0, 1, 1], [], []>} : vector<8x128xbf16>, vector<128x128xbf16>, vector<8x128xf32> -> vector<8x128xf32>
    %c0_53 = arith.constant 0 : index
    %c0_54 = arith.constant 0 : index
    %68 = vector.load %arg19[%c0_53, %c0_54] : memref<1x128xf32, #tpu.memory_space<vmem>>, vector<1x128xf32>
    %69 = vector.broadcast %68 : vector<1x128xf32> to vector<8x128xf32>
    %70 = arith.addf %67, %69 : vector<8x128xf32>
    %cst_55 = arith.constant 0.000000e+00 : f32
    %71 = vector.broadcast %cst_55 : f32 to vector<8x128xf32>
    %72 = arith.maximumf %70, %71 : vector<8x128xf32>
    %73 = arith.truncf %72 : vector<8x128xf32> to vector<8x128xbf16>
    %c0_56 = arith.constant 0 : index
    %c0_57 = arith.constant 0 : index
    %74 = vector.load %arg20[%c0_56, %c0_57] : memref<128x256xbf16, #tpu.memory_space<vmem>>, vector<128x256xbf16>
    %cst_58 = arith.constant dense<0.000000e+00> : vector<8x256xf32>
    %75 = tpu.matmul %73, %74, %cst_58 {dimension_numbers = #tpu.dot_dimension_numbers<[1], [0], [0], [1], [0, 0, 1, 1], [], []>} : vector<8x128xbf16>, vector<128x256xbf16>, vector<8x256xf32> -> vector<8x256xf32>
    %c0_59 = arith.constant 0 : index
    %c0_60 = arith.constant 0 : index
    %76 = vector.load %arg21[%c0_59, %c0_60] : memref<1x256xf32, #tpu.memory_space<vmem>>, vector<1x256xf32>
    %77 = vector.broadcast %76 : vector<1x256xf32> to vector<8x256xf32>
    %78 = arith.addf %75, %77 : vector<8x256xf32>
    %c0_61 = arith.constant 0 : index
    %c0_62 = arith.constant 0 : index
    %79 = vector.load %arg22[%c0_61, %c0_62] : memref<8x256xf32, #tpu.memory_space<vmem>>, vector<8x256xf32>
    tpu.vector_store %arg22[%c0_61, %c0_62], %78 {strides = array<i32>} : memref<8x256xf32, #tpu.memory_space<vmem>>, vector<8x256xf32>,
    return
  }
  func.func @transform_0(%arg0: i32) -> (i32, i32) {
    %c0_i32 = arith.constant 0 : i32
    %c0_i32_0 = arith.constant 0 : i32
    return %arg0, %c0_i32 : i32, i32
  }
  func.func @transform_1(%arg0: i32) -> (i32, i32) {
    %c0_i32 = arith.constant 0 : i32
    %c0_i32_0 = arith.constant 0 : i32
    %c0_i32_1 = arith.constant 0 : i32
    return %c0_i32, %c0_i32_0 : i32, i32
  }
  func.func @transform_2(%arg0: i32) -> (i32, i32) {
    %c0_i32 = arith.constant 0 : i32
    %c0_i32_0 = arith.constant 0 : i32
    %c0_i32_1 = arith.constant 0 : i32
    return %c0_i32, %c0_i32_0 : i32, i32
  }
  func.func @transform_3(%arg0: i32) -> (i32, i32) {
    %c0_i32 = arith.constant 0 : i32
    %c0_i32_0 = arith.constant 0 : i32
    %c0_i32_1 = arith.constant 0 : i32
    return %c0_i32, %c0_i32_0 : i32, i32
  }
  func.func @transform_4(%arg0: i32) -> (i32, i32) {
    %c0_i32 = arith.constant 0 : i32
    %c0_i32_0 = arith.constant 0 : i32
    %c0_i32_1 = arith.constant 0 : i32
    return %c0_i32, %c0_i32_0 : i32, i32
  }
  func.func @transform_5(%arg0: i32) -> (i32, i32) {
    %c0_i32 = arith.constant 0 : i32
    %c0_i32_0 = arith.constant 0 : i32
    %c0_i32_1 = arith.constant 0 : i32
    return %c0_i32, %c0_i32_0 : i32, i32
  }
  func.func @transform_6(%arg0: i32) -> (i32, i32) {
    %c0_i32 = arith.constant 0 : i32
    %c0_i32_0 = arith.constant 0 : i32
    %c0_i32_1 = arith.constant 0 : i32
    return %c0_i32, %c0_i32_0 : i32, i32
  }
  func.func @transform_7(%arg0: i32) -> (i32, i32) {
    %c0_i32 = arith.constant 0 : i32
    %c0_i32_0 = arith.constant 0 : i32
    %c0_i32_1 = arith.constant 0 : i32
    return %c0_i32, %c0_i32_0 : i32, i32
  }
  func.func @transform_8(%arg0: i32) -> (i32, i32) {
    %c0_i32 = arith.constant 0 : i32
    %c0_i32_0 = arith.constant 0 : i32
    %c0_i32_1 = arith.constant 0 : i32
    return %c0_i32, %c0_i32_0 : i32, i32
  }
  func.func @transform_9(%arg0: i32) -> (i32, i32) {
    %c0_i32 = arith.constant 0 : i32
    %c0_i32_0 = arith.constant 0 : i32
    %c0_i32_1 = arith.constant 0 : i32
    return %c0_i32, %c0_i32_0 : i32, i32
  }
  func.func @transform_10(%arg0: i32) -> (i32, i32) {
    %c0_i32 = arith.constant 0 : i32
    %c0_i32_0 = arith.constant 0 : i32
    %c0_i32_1 = arith.constant 0 : i32
    return %c0_i32, %c0_i32_0 : i32, i32
  }
  func.func @transform_11(%arg0: i32) -> (i32, i32) {
    %c0_i32 = arith.constant 0 : i32
    %c0_i32_0 = arith.constant 0 : i32
    %c0_i32_1 = arith.constant 0 : i32
    return %c0_i32, %c0_i32_0 : i32, i32
  }
  func.func @transform_12(%arg0: i32) -> (i32, i32) {
    %c0_i32 = arith.constant 0 : i32
    %c0_i32_0 = arith.constant 0 : i32
    %c0_i32_1 = arith.constant 0 : i32
    return %c0_i32, %c0_i32_0 : i32, i32
  }
  func.func @transform_13(%arg0: i32) -> (i32, i32) {
    %c0_i32 = arith.constant 0 : i32
    %c0_i32_0 = arith.constant 0 : i32
    %c0_i32_1 = arith.constant 0 : i32
    return %c0_i32, %c0_i32_0 : i32, i32
  }
  func.func @transform_14(%arg0: i32) -> (i32, i32) {
    %c0_i32 = arith.constant 0 : i32
    %c0_i32_0 = arith.constant 0 : i32
    %c0_i32_1 = arith.constant 0 : i32
    return %c0_i32, %c0_i32_0 : i32, i32
  }
  func.func @transform_15(%arg0: i32) -> (i32, i32) {
    %c0_i32 = arith.constant 0 : i32
    %c0_i32_0 = arith.constant 0 : i32
    %c0_i32_1 = arith.constant 0 : i32
    return %c0_i32, %c0_i32_0 : i32, i32
  }
  func.func @transform_16(%arg0: i32) -> (i32, i32) {
    %c0_i32 = arith.constant 0 : i32
    %c0_i32_0 = arith.constant 0 : i32
    %c0_i32_1 = arith.constant 0 : i32
    return %c0_i32, %c0_i32_0 : i32, i32
  }
  func.func @transform_17(%arg0: i32) -> (i32, i32) {
    %c0_i32 = arith.constant 0 : i32
    %c0_i32_0 = arith.constant 0 : i32
    %c0_i32_1 = arith.constant 0 : i32
    return %c0_i32, %c0_i32_0 : i32, i32
  }
  func.func @transform_18(%arg0: i32) -> (i32, i32) {
    %c0_i32 = arith.constant 0 : i32
    %c0_i32_0 = arith.constant 0 : i32
    %c0_i32_1 = arith.constant 0 : i32
    return %c0_i32, %c0_i32_0 : i32, i32
  }
  func.func @transform_19(%arg0: i32) -> (i32, i32) {
    %c0_i32 = arith.constant 0 : i32
    %c0_i32_0 = arith.constant 0 : i32
    %c0_i32_1 = arith.constant 0 : i32
    return %c0_i32, %c0_i32_0 : i32, i32
  }
  func.func @transform_20(%arg0: i32) -> (i32, i32) {
    %c0_i32 = arith.constant 0 : i32
    %c0_i32_0 = arith.constant 0 : i32
    %c0_i32_1 = arith.constant 0 : i32
    return %c0_i32, %c0_i32_0 : i32, i32
  }
  func.func @transform_21(%arg0: i32) -> (i32, i32) {
    %c0_i32 = arith.constant 0 : i32
    %c0_i32_0 = arith.constant 0 : i32
    return %arg0, %c0_i32 : i32, i32
  }
  func.func @transform_22(%arg0: i32) -> (i32, i32) {
    %c0_i32 = arith.constant 0 : i32
    %c0_i32_0 = arith.constant 0 : i32
    return %arg0, %c0_i32 : i32, i32
  }
}

</mosaic_0001>

<bundles_post_ra>
// kernel: aenet_forward.1
= control target key start
LH: loop header
LB: loop body
LE: loop exit
PB: predicated region body
PF: predicated region fallthrough
CT: control target
= control target key end

     0   :  { %s2637_s0 = inlined_call_operand.vmem [shape: bf16[8,256], index: 0, kind: input, shape index: {}]   ;;  %s2638_s1 = inlined_call_operand.vmem [shape: bf16[256,128], index: 1, kind: input, shape index: {}]   ;;  %s2639_s2 = inlined_call_operand.vmem [shape: f32[1,128], index: 2, kind: input, shape index: {}]   ;;  %s2640_s3 = inlined_call_operand.hbm [shape: bf16[128,128], index: 3, kind: input, shape index: {}]   ;;  %s2641_s4 = inlined_call_operand.vmem [shape: f32[1,128], index: 4, kind: input, shape index: {}]   ;;  %s2642_s5 = inlined_call_operand.hbm [shape: bf16[128,128], index: 5, kind: input, shape index: {}]   ;;  %s2643_s6 = inlined_call_operand.vmem [shape: f32[1,128], index: 6, kind: input, shape index: {}]   ;;  %s2644_s7 = inlined_call_operand.hbm [shape: bf16[128,128], index: 7, kind: input, shape index: {}]   ;;  %s2645_s8 = inlined_call_operand.vmem [shape: f32[1,128], index: 8, kind: input, shape index: {}]   ;;  %s2646_s9 = inlined_call_operand.hbm [shape: bf16[128,128], index: 9, kind: input, shape index: {}]   ;;  %s2647_s10 = inlined_call_operand.vmem [shape: f32[1,128], index: 10, kind: input, shape index: {}]   ;;  %s2648_s11 = inlined_call_operand.hbm [shape: bf16[128,128], index: 11, kind: input, shape index: {}]   ;;  %s2649_s12 = inlined_call_operand.vmem [shape: f32[1,128], index: 12, kind: input, shape index: {}]   ;;  %s2650_s13 = inlined_call_operand.hbm [shape: bf16[128,128], index: 13, kind: input, shape index: {}]   ;;  %s2651_s14 = inlined_call_operand.vmem [shape: f32[1,128], index: 14, kind: input, shape index: {}]   ;;  %s2652_s15 = inlined_call_operand.hbm [shape: bf16[128,128], index: 15, kind: input, shape index: {}]   ;;  %s2653_s16 = inlined_call_operand.vmem [shape: f32[1,128], index: 16, kind: input, shape index: {}]   ;;  %s2654_s17 = inlined_call_operand.hbm [shape: bf16[128,128], index: 17, kind: input, shape index: {}]   ;;  %s2655_s18 = inlined_call_operand.vmem [shape: f32[1,128], index: 18, kind: input, shape index: {}]   ;;  %s2656_s19 = inlined_call_operand.vmem [shape: bf16[128,256], index: 19, kind: input, shape index: {}]   ;;  %s2657_s20 = inlined_call_operand.vmem [shape: f32[1,256], index: 20, kind: input, shape index: {}]   ;;  %s2658_s21 = inlined_call_operand.hbm [shape: f32[8,256], index: 21, kind: output, shape index: {0}]   ;;  %s2659_s22 = inlined_call_operand.vmem [shape: bf16[8,128], index: 22, kind: output, shape index: {1}]  }
   0x1   :  { %2664 = sst [smem:[#allocation23_spill]] %s2637_s0 }
   0x2   :  { %2665 = sst [smem:[#allocation24_spill]] %s2638_s1 }
   0x3   :  { %2666 = sst [smem:[#allocation25_spill]] %s2639_s2 }
   0x4   :  { %2667 = sst [smem:[#allocation26_spill]] %s2640_s3 }
   0x5   :  { %2668 = sst [smem:[#allocation27_spill]] %s2641_s4 }
   0x6   :  { %2669 = sst [smem:[#allocation28_spill]] %s2642_s5 }
   0x7   :  { %2670 = sst [smem:[#allocation29_spill]] %s2643_s6 }
   0x8   :  { %2671 = sst [smem:[#allocation30_spill]] %s2658_s21 }
   0x9   :  { %28 = vsyncpa [#allocation3], 0 }
   0xa   :  { %29 = vsyncpa [#allocation6], 0 }
   0xb   :  { %30 = vsyncpa [#allocation9], 0 }
   0xc   :  { %31 = vsyncpa [#allocation12], 0 }
   0xd   :  { %32 = vsyncpa [#allocation15], 0 }
   0xe   :  { %33 = vsyncpa [#allocation4], 0  ;;  %s2136_s3 = smov [#allocation5]   ;;  %s2137_s29 = smov [#allocation8]  }
   0xf   :  { %s59_s28 = sshll.u32 %s2136_s3, 4  ;;  %s87_s30 = sshll.u32 %s2137_s29, 4  ;;  %s60_s28 = int_to_ptr.vmem [resolvable:$true] %s59_s28  ;;  %s2265_s30 = int_to_ptr.vmem [resolvable:$true] %s87_s30 }
  0x10   :  { %s2672_s23 = sld [smem:[#allocation28_spill]] }
  0x16   :  { %s1926_s1 = scalar_lea.hbm %s2672_s23, 1024 }
  0x17   :  { %p1927_p0 = scmp.ne.s32.totalorder %s2672_s23, %s1926_s1  ;;  %p1930_p1 = scmp.lt.u32.totalorder %s1926_s1, %s2672_s23 }
  0x19   :  { %p1932_p2 = pnand %p1930_p1, %p1927_p0 }
  0x1b   :  { %1935 = shalt.err (!%p1932_p2)
}
  0x1c   :  { %s1936_s26 = scalar_lea.vmem %s60_s28, 1024  ;;  %p1941_p4 = scmp.lt.s32.totalorder %s60_s28, %s60_s28 }
  0x1d   :  { %p1937_p3 = scmp.ne.s32.totalorder %s60_s28, %s1936_s26  ;;  %p1942_p5 = scmp.lt.s32.totalorder %s1936_s26, %s1936_s26 }
  0x1f   :  { %p1943_p6 = por %p1942_p5, %p1941_p4 }
  0x21   :  { %p1944_p7 = pnand %p1943_p6, %p1937_p3 }
  0x23   :  { %1947 = shalt.err (!%p1944_p7)
}
  0x24   :  { %s2138_s2 = smov 64   ;;  %s2139_s27 = smov 4  }
  0x25   :  { %65 = dma.hbm_to_vmem [thread:$0]  %s2672_s23, 1024, %s60_s28, [#allocation6], %s2138_s2, %s2138_s2, %s2139_s27  }
  0x26   :  { %s1948_s1 = scalar_lea.hbm %s2646_s9, 1024 }
  0x27   :  { %p1949_p8 = scmp.ne.s32.totalorder %s2646_s9, %s1948_s1  ;;  %p1952_p9 = scmp.lt.u32.totalorder %s1948_s1, %s2646_s9 }
  0x29   :  { %p1954_p10 = pnand %p1952_p9, %p1949_p8 }
  0x2b   :  { %1957 = shalt.err (!%p1954_p10)
}
  0x2c   :  { %s1958_s26 = scalar_lea.vmem %s2265_s30, 1024  ;;  %p1963_p12 = scmp.lt.s32.totalorder %s2265_s30, %s2265_s30 }
  0x2d   :  { %p1959_p11 = scmp.ne.s32.totalorder %s2265_s30, %s1958_s26  ;;  %p1964_p13 = scmp.lt.s32.totalorder %s1958_s26, %s1958_s26 }
  0x2f   :  { %p1965_p0 = por %p1964_p13, %p1963_p12 }
  0x31   :  { %p1966_p1 = pnand %p1965_p0, %p1959_p11 }
  0x33   :  { %1969 = shalt.err (!%p1966_p1)
}
  0x34   :  { %93 = dma.hbm_to_vmem [thread:$0]  %s2646_s9, 1024, %s2265_s30, [#allocation9], %s2138_s2, %s2138_s2, %s2139_s27  }
  0x35   :  { %s2140_s3 = smov [#allocation11]   ;;  %s2141_s4 = smov [#allocation2]  }
  0x36   :  { %s115_s29 = sshll.u32 %s2140_s3, 4  ;;  %s45_s0 = sshll.u32 %s2141_s4, 4  ;;  %s116_s29 = int_to_ptr.vmem [resolvable:$true] %s115_s29  ;;  %s2302_s0 = int_to_ptr.vmem [resolvable:$true] %s45_s0 }
  0x37   :  { %s1970_s24 = scalar_lea.hbm %s2650_s13, 1024 }
  0x38   :  { %p1971_p2 = scmp.ne.s32.totalorder %s2650_s13, %s1970_s24  ;;  %p1974_p3 = scmp.lt.u32.totalorder %s1970_s24, %s2650_s13 }
  0x3a   :  { %p1976_p4 = pnand %p1974_p3, %p1971_p2 }
  0x3c   :  { %1979 = shalt.err (!%p1976_p4)
}
  0x3d   :  { %s1980_s9 = scalar_lea.vmem %s116_s29, 1024  ;;  %p1985_p6 = scmp.lt.s32.totalorder %s116_s29, %s116_s29 }
  0x3e   :  { %p1981_p5 = scmp.ne.s32.totalorder %s116_s29, %s1980_s9  ;;  %p1986_p7 = scmp.lt.s32.totalorder %s1980_s9, %s1980_s9 }
  0x40   :  { %p1987_p8 = por %p1986_p7, %p1985_p6 }
  0x42   :  { %p1988_p9 = pnand %p1987_p8, %p1981_p5 }
  0x44   :  { %1991 = shalt.err (!%p1988_p9)
}
  0x45   :  { %121 = dma.hbm_to_vmem [thread:$0]  %s2650_s13, 1024, %s116_s29, [#allocation12], %s2138_s2, %s2138_s2, %s2139_s27  }
  0x46   :  { %s2673_s21 = sld [smem:[#allocation26_spill]] }
  0x4c   :  { %s1992_s4 = scalar_lea.hbm %s2673_s21, 1024 }
  0x4d   :  { %p1993_p10 = scmp.ne.s32.totalorder %s2673_s21, %s1992_s4  ;;  %p1996_p11 = scmp.lt.u32.totalorder %s1992_s4, %s2673_s21 }
  0x4f   :  { %p1998_p12 = pnand %p1996_p11, %p1993_p10 }
  0x51   :  { %2001 = shalt.err (!%p1998_p12)
}
  0x52   :  { %s2002_s25 = scalar_lea.vmem %s2302_s0, 1024  ;;  %p2007_p0 = scmp.lt.s32.totalorder %s2302_s0, %s2302_s0 }
  0x53   :  { %p2003_p13 = scmp.ne.s32.totalorder %s2302_s0, %s2002_s25  ;;  %p2008_p1 = scmp.lt.s32.totalorder %s2002_s25, %s2002_s25 }
  0x55   :  { %p2009_p2 = por %p2008_p1, %p2007_p0 }
  0x57   :  { %p2010_p3 = pnand %p2009_p2, %p2003_p13 }
  0x59   :  { %2013 = shalt.err (!%p2010_p3)
}
  0x5a   :  { %51 = dma.hbm_to_vmem [thread:$0]  %s2673_s21, 1024, %s2302_s0, [#allocation3], %s2138_s2, %s2138_s2, %s2139_s27  }
  0x5b   :  { %s2142_s26 = smov [#allocation7]   ;;  %s2143_s30 = smov [#allocation10]  }
  0x5c   :  { %s73_s9 = sshll.u32 %s2142_s26, 4  ;;  %s101_s28 = sshll.u32 %s2143_s30, 4  ;;  %s74_s9 = int_to_ptr.vmem [resolvable:$true] %s73_s9  ;;  %s2339_s28 = int_to_ptr.vmem [resolvable:$true] %s101_s28 }
  0x5d   :  { %s2014_s4 = scalar_lea.hbm %s2644_s7, 1024 }
  0x5e   :  { %p2015_p4 = scmp.ne.s32.totalorder %s2644_s7, %s2014_s4  ;;  %p2018_p5 = scmp.lt.u32.totalorder %s2014_s4, %s2644_s7 }
  0x60   :  { %p2020_p6 = pnand %p2018_p5, %p2015_p4 }
  0x62   :  { %2023 = shalt.err (!%p2020_p6)
}
  0x63   :  { %s2024_s0 = scalar_lea.vmem %s74_s9, 1024  ;;  %p2029_p8 = scmp.lt.s32.totalorder %s74_s9, %s74_s9 }
  0x64   :  { %p2025_p7 = scmp.ne.s32.totalorder %s74_s9, %s2024_s0  ;;  %p2030_p9 = scmp.lt.s32.totalorder %s2024_s0, %s2024_s0 }
  0x66   :  { %p2031_p10 = por %p2030_p9, %p2029_p8 }
  0x68   :  { %p2032_p11 = pnand %p2031_p10, %p2025_p7 }
  0x6a   :  { %2035 = shalt.err (!%p2032_p11)
}
  0x6b   :  { %79 = dma.hbm_to_vmem [thread:$0]  %s2644_s7, 1024, %s74_s9, [#allocation6], %s2138_s2, %s2138_s2, %s2139_s27  }
  0x6c   :  { %s2036_s26 = scalar_lea.hbm %s2648_s11, 1024 }
  0x6d   :  { %p2037_p12 = scmp.ne.s32.totalorder %s2648_s11, %s2036_s26  ;;  %p2040_p13 = scmp.lt.u32.totalorder %s2036_s26, %s2648_s11 }
  0x6f   :  { %p2042_p0 = pnand %p2040_p13, %p2037_p12 }
  0x71   :  { %2045 = shalt.err (!%p2042_p0)
}
  0x72   :  { %s2046_s1 = scalar_lea.vmem %s2339_s28, 1024  ;;  %p2051_p2 = scmp.lt.s32.totalorder %s2339_s28, %s2339_s28 }
  0x73   :  { %p2047_p1 = scmp.ne.s32.totalorder %s2339_s28, %s2046_s1  ;;  %p2052_p3 = scmp.lt.s32.totalorder %s2046_s1, %s2046_s1 }
  0x75   :  { %p2053_p4 = por %p2052_p3, %p2051_p2 }
  0x77   :  { %p2054_p5 = pnand %p2053_p4, %p2047_p1 }
  0x79   :  { %2057 = shalt.err (!%p2054_p5)
}
  0x7a   :  { %107 = dma.hbm_to_vmem [thread:$0]  %s2648_s11, 1024, %s2339_s28, [#allocation9], %s2138_s2, %s2138_s2, %s2139_s27  }
  0x7b   :  { %s2144_s5 = smov [#allocation13]   ;;  %s2145_s6 = smov [#allocation14]  }
  0x7c   :  { %s129_s24 = sshll.u32 %s2144_s5, 4  ;;  %s143_s0 = sshll.u32 %s2145_s6, 4  ;;  %s130_s24 = int_to_ptr.vmem [resolvable:$true] %s129_s24  ;;  %s2376_s0 = int_to_ptr.vmem [resolvable:$true] %s143_s0 }
  0x7d   :  { %s2058_s13 = scalar_lea.hbm %s2652_s15, 1024 }
  0x7e   :  { %p2059_p6 = scmp.ne.s32.totalorder %s2652_s15, %s2058_s13  ;;  %p2062_p7 = scmp.lt.u32.totalorder %s2058_s13, %s2652_s15 }
  0x80   :  { %p2064_p8 = pnand %p2062_p7, %p2059_p6 }
  0x82   :  { %2067 = shalt.err (!%p2064_p8)
}
  0x83   :  { %s2068_s11 = scalar_lea.vmem %s130_s24, 1024  ;;  %p2073_p10 = scmp.lt.s32.totalorder %s130_s24, %s130_s24 }
  0x84   :  { %p2069_p9 = scmp.ne.s32.totalorder %s130_s24, %s2068_s11  ;;  %p2074_p11 = scmp.lt.s32.totalorder %s2068_s11, %s2068_s11 }
  0x86   :  { %p2075_p12 = por %p2074_p11, %p2073_p10 }
  0x88   :  { %p2076_p13 = pnand %p2075_p12, %p2069_p9 }
  0x8a   :  { %2079 = shalt.err (!%p2076_p13)
}
  0x8b   :  { %135 = dma.hbm_to_vmem [thread:$0]  %s2652_s15, 1024, %s130_s24, [#allocation12], %s2138_s2, %s2138_s2, %s2139_s27  }
  0x8c   :  { %s2080_s7 = scalar_lea.hbm %s2654_s17, 1024 }
  0x8d   :  { %p2081_p0 = scmp.ne.s32.totalorder %s2654_s17, %s2080_s7  ;;  %p2084_p1 = scmp.lt.u32.totalorder %s2080_s7, %s2654_s17 }
  0x8f   :  { %p2086_p2 = pnand %p2084_p1, %p2081_p0 }
  0x91   :  { %2089 = shalt.err (!%p2086_p2)
}
  0x92   :  { %s2090_s25 = scalar_lea.vmem %s2376_s0, 1024  ;;  %p2095_p4 = scmp.lt.s32.totalorder %s2376_s0, %s2376_s0 }
  0x93   :  { %p2091_p3 = scmp.ne.s32.totalorder %s2376_s0, %s2090_s25  ;;  %p2096_p5 = scmp.lt.s32.totalorder %s2090_s25, %s2090_s25 }
  0x95   :  { %p2097_p6 = por %p2096_p5, %p2095_p4 }
  0x97   :  { %p2098_p7 = pnand %p2097_p6, %p2091_p3 }
  0x99   :  { %2101 = shalt.err (!%p2098_p7)
}
  0x9a   :  { %149 = dma.hbm_to_vmem [thread:$0]  %s2654_s17, 1024, %s2376_s0, [#allocation15], %s2138_s2, %s2138_s2, %s2139_s27  }
  0x9b   :  { %2124 = dma.done.wait [#allocation3], 1024  }
  0x9c   :  { %2125 = vsyncadd [#allocation3], 4294966272 }
  0x9d   :  { %2126 = dma.done.wait [#allocation6], 2048  }
  0x9e   :  { %2127 = vsyncadd [#allocation6], 4294965248 }
  0x9f   :  { %2128 = dma.done.wait [#allocation9], 2048  }
  0xa0   :  { %2129 = vsyncadd [#allocation9], 4294965248 }
  0xa1   :  { %2130 = dma.done.wait [#allocation12], 2048  }
  0xa2   :  { %2131 = vsyncadd [#allocation12], 4294965248 }
  0xa3   :  { %2132 = dma.done.wait [#allocation15], 1024  }
  0xa4   :  { %2133 = vsyncadd [#allocation15], 4294966272  ;;  %v2146_v0 = vmov 0.0   ;;  %s2674_s26 = sld [smem:[#allocation24_spill]]  ;;  %s2675_s23 = sld [smem:[#allocation23_spill]]  ;;  %v1838_v14 = vld [vmem:[#allocation2] sm:$0xff]  }
  0xa5   :  { %1646 = vmatprep.subr.bf16.mxu1 %v2146_v0  ;;  %v1839_v17 = vld [vmem:[#allocation2 + $0x8] sm:$0xff]   ;;  %v1840_v20 = vld [vmem:[#allocation2 + $0x10] sm:$0xff]   ;;  %v1841_v22 = vld [vmem:[#allocation2 + $0x18] sm:$0xff]   ;;  %vm2147_vm0 = vmmov 0   ;;  %s2676_s5 = sld [smem:[#allocation25_spill]]  ;;  %s2677_s25 = sld [smem:[#allocation27_spill]] }
  0xa6   :  { %1647 = vmatpush3.bf16.msra.mxu1 %v1838_v14  ;;  %v1842_v24 = vld [vmem:[#allocation2 + $0x20] sm:$0xff]   ;;  %v1843_v25 = vld [vmem:[#allocation2 + $0x28] sm:$0xff]   ;;  %v1844_v26 = vld [vmem:[#allocation2 + $0x30] sm:$0xff]   ;;  %1662 = vmatprep.mubr.msk.bf16.mxu1 %vm2147_vm0, %v2146_v0  ;;  %s2678_s13 = sld [smem:[#allocation29_spill]]  ;;  %s2149_s9 = smov [#allocation16]  }
  0xa7   :  { %1648 = vmatprep.subr.bf16.mxu1 %v2146_v0  ;;  %v1845_v27 = vld [vmem:[#allocation2 + $0x38] sm:$0xff]   ;;  %v1846_v28 = vld [vmem:[#allocation5] sm:$0xff]   ;;  %v1847_v29 = vld [vmem:[#allocation5 + $0x8] sm:$0xff]  }
  0xa8   :  { %v1848_v30 = vld [vmem:[#allocation5 + $0x10] sm:$0xff]   ;;  %v1849_v31 = vld [vmem:[#allocation5 + $0x18] sm:$0xff]   ;;  %v1850_v32 = vld [vmem:[#allocation5 + $0x20] sm:$0xff]  }
  0xa9   :  { %v1851_v33 = vld [vmem:[#allocation5 + $0x28] sm:$0xff]   ;;  %v1852_v43 = vld [vmem:[#allocation5 + $0x30] sm:$0xff]   ;;  %v1853_v44 = vld [vmem:[#allocation5 + $0x38] sm:$0xff]  }
  0xaa   :  { %v1820_v1 = vld [vmem:[%s2674_s26 + $0x40] sm:$0xff]   ;;  %v1822_v3 = vld [vmem:[%s2674_s26 + $0x48] sm:$0xff]   ;;  %v1824_v5 = vld [vmem:[%s2674_s26 + $0x50] sm:$0xff]   ;;  %1649 = vmatpush3.bf16.msra.mxu1 %v1839_v17 }
  0xab   :  { %v1821_v2 = vld [vmem:[%s2674_s26] sm:$0xff]   ;;  %1552 = vmatprep.subr.bf16.mxu0 %v1820_v1  ;;  %v1823_v4 = vld [vmem:[%s2674_s26 + $0x8] sm:$0xff]   ;;  %v1825_v6 = vld [vmem:[%s2674_s26 + $0x10] sm:$0xff]   ;;  %1650 = vmatprep.subr.bf16.mxu1 %v2146_v0 }
  0xac   :  { %1553 = vmatpush3.bf16.msra.mxu0 %v1821_v2  ;;  %v1826_v7 = vld [vmem:[%s2674_s26 + $0x58] sm:$0xff]   ;;  %v1828_v9 = vld [vmem:[%s2674_s26 + $0x60] sm:$0xff]   ;;  %v1830_v11 = vld [vmem:[%s2674_s26 + $0x68] sm:$0xff]  }
  0xad   :  { %1554 = vmatprep.subr.bf16.mxu0 %v1822_v3  ;;  %v1827_v8 = vld [vmem:[%s2674_s26 + $0x18] sm:$0xff]   ;;  %v1829_v10 = vld [vmem:[%s2674_s26 + $0x20] sm:$0xff]   ;;  %v1831_v15 = vld [vmem:[%s2674_s26 + $0x28] sm:$0xff]  }
  0xae   :  { %v181_v12 = vld [vmem:[%s2675_s23] sm:$0xff]  ;;  %v1832_v16 = vld [vmem:[%s2674_s26 + $0x70] sm:$0xff]   ;;  %v1834_v19 = vld [vmem:[%s2674_s26 + $0x78] sm:$0xff]   ;;  %1651 = vmatpush3.bf16.msra.mxu1 %v1840_v20 }
  0xaf   :  { %v1447_v13 = vcombine.high %v181_v12, %v181_v12  ;;  %v1833_v18 = vld [vmem:[%s2674_s26 + $0x30] sm:$0xff]   ;;  %v1835_v21 = vld [vmem:[%s2674_s26 + $0x38] sm:$0xff]   ;;  %1652 = vmatprep.subr.bf16.mxu1 %v2146_v0  ;;  %v1446_v23 = vcombine.low %v181_v12, %v181_v12  ;;  %v1445_v35 = vld [vmem:[%s2676_s5] ss:$0 sm:$0xff] }
  0xb0   :  { %1555 = vmatpush3.bf16.msra.mxu0 %v1823_v4  ;;  %v1854_v45 = vld [vmem:[#allocation7] sm:$0xff]   ;;  %v1855_v46 = vld [vmem:[#allocation7 + $0x8] sm:$0xff]   ;;  %v1856_v47 = vld [vmem:[#allocation7 + $0x10] sm:$0xff]  }
  0xb1   :  { %1556 = vmatprep.subr.bf16.mxu0 %v1824_v5  ;;  %356 = vmatprep.mubr.bf16.mxu0 %v1447_v13  ;;  %v1857_v48 = vld [vmem:[#allocation7 + $0x18] sm:$0xff]   ;;  %v1858_v49 = vld [vmem:[#allocation7 + $0x20] sm:$0xff]   ;;  %v1859_v50 = vld [vmem:[#allocation7 + $0x28] sm:$0xff]  }
  0xb2   :  { %1653 = vmatpush3.bf16.msra.mxu1 %v1841_v22  ;;  %v1464_v51 = vld [vmem:[%s2677_s25] ss:$0 sm:$0xff]  ;;  %v1860_v59 = vld [vmem:[#allocation7 + $0x30] sm:$0xff]   ;;  %v1861_v60 = vld [vmem:[#allocation7 + $0x38] sm:$0xff]  }
  0xb3   :  { %1654 = vmatprep.subr.bf16.mxu1 %v2146_v0  ;;  %v1862_v61 = vld [vmem:[#allocation8] sm:$0xff]   ;;  %v1863_v62 = vld [vmem:[#allocation8 + $0x8] sm:$0xff]   ;;  %v1864_v63 = vld [vmem:[#allocation8 + $0x10] sm:$0xff]  }
  0xb4   :  { %1557 = vmatpush3.bf16.msra.mxu0 %v1825_v6  ;;  %v1865_v1 = vld [vmem:[#allocation8 + $0x18] sm:$0xff]   ;;  %v1866_v2 = vld [vmem:[#allocation8 + $0x20] sm:$0xff]   ;;  %v1867_v3 = vld [vmem:[#allocation8 + $0x28] sm:$0xff]  }
  0xb5   :  { %1558 = vmatprep.subr.bf16.mxu0 %v1826_v7  ;;  %v1473_v4 = vld [vmem:[%s2678_s13] ss:$0 sm:$0xff]  ;;  %v1868_v12 = vld [vmem:[#allocation8 + $0x30] sm:$0xff]   ;;  %v1869_v13 = vld [vmem:[#allocation8 + $0x38] sm:$0xff]  }
  0xb6   :  { %1655 = vmatpush3.bf16.msra.mxu1 %v1842_v24  ;;  %v1870_v14 = vld [vmem:[#allocation10] sm:$0xff]   ;;  %v1873_v17 = vld [vmem:[#allocation10 + $0x18] sm:$0xff]  }
  0xb7   :  { %1656 = vmatprep.subr.bf16.mxu1 %v2146_v0  ;;  %v1482_v20 = vld [vmem:[%s2645_s8] ss:$0 sm:$0xff] }
  0xb8   :  { %1559 = vmatpush3.bf16.msra.mxu0 %v1827_v8 }
  0xb9   :  { %1560 = vmatprep.subr.bf16.mxu0 %v1828_v9 }
  0xba   :  { %1657 = vmatpush3.bf16.msra.mxu1 %v1843_v25 }
  0xbb   :  { %1658 = vmatprep.subr.bf16.mxu1 %v2146_v0 }
  0xbc   :  { %1561 = vmatpush3.bf16.msra.mxu0 %v1829_v10 }
  0xbd   :  { %1562 = vmatprep.subr.bf16.mxu0 %v1830_v11 }
  0xbe   :  { %1659 = vmatpush3.bf16.msra.mxu1 %v1844_v26 }
  0xbf   :  { %1660 = vmatprep.subr.bf16.mxu1 %v2146_v0 }
  0xc0   :  { %1563 = vmatpush3.bf16.msra.mxu0 %v1831_v15  ;;  %v1871_v15 = vld [vmem:[#allocation10 + $0x8] sm:$0xff]  }
  0xc1   :  { %1564 = vmatprep.subr.bf16.mxu0 %v1832_v16  ;;  %v1872_v16 = vld [vmem:[#allocation10 + $0x10] sm:$0xff]  }
  0xc2   :  { %1661 = vmatpush3.bf16.msra.mxu1 %v1845_v27 }
  0xc3   :  { %1686 = vmatprep.subr.bf16.mxu1 %v2146_v0 }
  0xc4   :  { %1565 = vmatpush3.bf16.msra.mxu0 %v1833_v18  ;;  %v1874_v18 = vld [vmem:[#allocation10 + $0x20] sm:$0xff]  }
  0xc5   :  { %1566 = vmatprep.subr.bf16.mxu0 %v1834_v19  ;;  %v1875_v19 = vld [vmem:[#allocation10 + $0x28] sm:$0xff]  }
  0xc8   :  { %1567 = vmatpush3.bf16.msra.mxu0 %v1835_v21 }
  0xc9   :  { %1666 = vmatprep.subr.bf16.mxu0 %v2146_v0 }
  0xcb   :  { %357 = vmatmul.mubr.bf16.vlgmr.msra.gmra.mrb[0].mxu0 %v1446_v23 }
  0xcc   :  { %1682 = vmatprep.mubr.msk.bf16.mxu0 %vm2147_vm0, %v2146_v0  ;;  %1667 = vmatpush3.bf16.msra.mxu0 %v1846_v28  ;;  %v1876_v28 = vld [vmem:[#allocation10 + $0x30] sm:$0xff]  }
  0xcd   :  { %1668 = vmatprep.subr.bf16.mxu0 %v2146_v0 }
  0xd0   :  { %1669 = vmatpush3.bf16.msra.mxu0 %v1847_v29  ;;  %v1877_v29 = vld [vmem:[#allocation10 + $0x38] sm:$0xff]  }
  0xd1   :  { %1670 = vmatprep.subr.bf16.mxu0 %v2146_v0 }
  0xd4   :  { %1671 = vmatpush3.bf16.msra.mxu0 %v1848_v30  ;;  %v1878_v30 = vld [vmem:[#allocation11] sm:$0xff]  }
  0xd5   :  { %1672 = vmatprep.subr.bf16.mxu0 %v2146_v0 }
  0xd8   :  { %1673 = vmatpush3.bf16.msra.mxu0 %v1849_v31  ;;  %v1879_v31 = vld [vmem:[#allocation11 + $0x8] sm:$0xff]  }
  0xd9   :  { %1674 = vmatprep.subr.bf16.mxu0 %v2146_v0 }
  0xdc   :  { %1675 = vmatpush3.bf16.msra.mxu0 %v1850_v32  ;;  %v1880_v32 = vld [vmem:[#allocation11 + $0x10] sm:$0xff]  }
  0xdd   :  { %1676 = vmatprep.subr.bf16.mxu0 %v2146_v0 }
  0xe0   :  { %1677 = vmatpush3.bf16.msra.mxu0 %v1851_v33  ;;  %v1881_v33 = vld [vmem:[#allocation11 + $0x18] sm:$0xff]  }
  0xe1   :  { %1678 = vmatprep.subr.bf16.mxu0 %v2146_v0 }
  0xe4   :  { %1679 = vmatpush3.bf16.msra.mxu0 %v1852_v43 }
  0xe5   :  { %1680 = vmatprep.subr.bf16.mxu0 %v2146_v0 }
  0xe8   :  { %1681 = vmatpush3.bf16.msra.mxu0 %v1853_v44  ;;  %v1884_v44 = vld [vmem:[#allocation11 + $0x30] sm:$0xff]  }
  0xe9   :  { %1706 = vmatprep.subr.bf16.mxu0 %v2146_v0 }
 0x19e   :  { %v1568_v34 = vpop.f32.mrb[0].mxu0 }
 0x19f   :  { %v1569_v36 = vpop.f32.mrb[1].mxu0 }
 0x1a0   :  { %v1570_v37 = vadd.f32 %v1569_v36, %v1568_v34  ;;  %v1571_v38 = vpop.f32.mrb[2].mxu0  ;;  %v1882_v34 = vld [vmem:[#allocation11 + $0x20] sm:$0xff]  }
 0x1a1   :  { %v1572_v39 = vpop.f32.mrb[3].mxu0  ;;  %v1491_v36 = vld [vmem:[%s2647_s10] ss:$0 sm:$0xff] }
 0x1a2   :  { %v359_v40 = vadd.f32 %v1570_v37, %v1445_v35  ;;  %v1883_v35 = vld [vmem:[#allocation11 + $0x28] sm:$0xff]  }
 0x1a4   :  { %v364_v41 = vmax.f32 %v359_v40, 0.0 }
 0x1a6   :  { %v365_v42 = vpack.c.bf16 %v364_v41, %v364_v41 }
 0x1a8   :  { %1663 = vmatmul.mubr.bf16.vlgmr.msra.gmra.mrb[0].mxu1 %v365_v42 }
 0x1a9   :  { %1702 = vmatprep.mubr.msk.bf16.mxu1 %vm2147_vm0, %v2146_v0  ;;  %1687 = vmatpush3.bf16.msra.mxu1 %v1854_v45  ;;  %v1885_v45 = vld [vmem:[#allocation11 + $0x38] sm:$0xff]  }
 0x1aa   :  { %1688 = vmatprep.subr.bf16.mxu1 %v2146_v0 }
 0x1ad   :  { %1689 = vmatpush3.bf16.msra.mxu1 %v1855_v46  ;;  %v1886_v46 = vld [vmem:[#allocation13] sm:$0xff]  }
 0x1ae   :  { %1690 = vmatprep.subr.bf16.mxu1 %v2146_v0 }
 0x1b1   :  { %1691 = vmatpush3.bf16.msra.mxu1 %v1856_v47  ;;  %v1887_v47 = vld [vmem:[#allocation13 + $0x8] sm:$0xff]  }
 0x1b2   :  { %1692 = vmatprep.subr.bf16.mxu1 %v2146_v0 }
 0x1b5   :  { %1693 = vmatpush3.bf16.msra.mxu1 %v1857_v48  ;;  %v1888_v48 = vld [vmem:[#allocation13 + $0x10] sm:$0xff]  }
 0x1b6   :  { %1694 = vmatprep.subr.bf16.mxu1 %v2146_v0 }
 0x1b9   :  { %1695 = vmatpush3.bf16.msra.mxu1 %v1858_v49  ;;  %v1889_v49 = vld [vmem:[#allocation13 + $0x18] sm:$0xff]  }
 0x1ba   :  { %1696 = vmatprep.subr.bf16.mxu1 %v2146_v0 }
 0x1bd   :  { %1697 = vmatpush3.bf16.msra.mxu1 %v1859_v50  ;;  %v1890_v50 = vld [vmem:[#allocation13 + $0x20] sm:$0xff]  }
 0x1be   :  { %1698 = vmatprep.subr.bf16.mxu1 %v2146_v0 }
 0x1c1   :  { %1699 = vmatpush3.bf16.msra.mxu1 %v1860_v59 }
 0x1c2   :  { %1700 = vmatprep.subr.bf16.mxu1 %v2146_v0 }
 0x1c5   :  { %1701 = vmatpush3.bf16.msra.mxu1 %v1861_v60  ;;  %v1892_v60 = vld [vmem:[#allocation13 + $0x30] sm:$0xff]  }
 0x1c6   :  { %1726 = vmatprep.subr.bf16.mxu1 %v2146_v0 }
 0x27b   :  { %v471_v52 = vpop.f32.mrb[0].mxu1 }
 0x27c   :  { %v472_v53 = vadd.f32 %v1464_v51, %v471_v52  ;;  %v1664_v54 = vpop.f32.mrb[1].mxu1  ;;  %v1891_v51 = vld [vmem:[#allocation13 + $0x28] sm:$0xff]   ;;  %v1500_v52 = vld [vmem:[%s2649_s12] ss:$0 sm:$0xff] }
 0x27d   :  { %v474_v55 = vpop.f32.mrb[2].mxu1 }
 0x27e   :  { %v477_v56 = vmax.f32 %v472_v53, 0.0  ;;  %v1665_v57 = vpop.f32.mrb[3].mxu1 }
 0x280   :  { %v478_v58 = vpack.c.bf16 %v477_v56, %v477_v56 }
 0x282   :  { %1683 = vmatmul.mubr.bf16.vlgmr.msra.gmra.mrb[4].mxu0 %v478_v58 }
 0x283   :  { %1722 = vmatprep.mubr.msk.bf16.mxu0 %vm2147_vm0, %v2146_v0  ;;  %1707 = vmatpush3.bf16.msra.mxu0 %v1862_v61  ;;  %v1893_v61 = vld [vmem:[#allocation13 + $0x38] sm:$0xff]  }
 0x284   :  { %1708 = vmatprep.subr.bf16.mxu0 %v2146_v0 }
 0x287   :  { %1709 = vmatpush3.bf16.msra.mxu0 %v1863_v62  ;;  %v1894_v62 = vld [vmem:[#allocation14] sm:$0xff]  }
 0x288   :  { %1710 = vmatprep.subr.bf16.mxu0 %v2146_v0 }
 0x28b   :  { %1711 = vmatpush3.bf16.msra.mxu0 %v1864_v63  ;;  %v1895_v63 = vld [vmem:[#allocation14 + $0x8] sm:$0xff]  }
 0x28c   :  { %1712 = vmatprep.subr.bf16.mxu0 %v2146_v0 }
 0x28f   :  { %1713 = vmatpush3.bf16.msra.mxu0 %v1865_v1  ;;  %v1896_v1 = vld [vmem:[#allocation14 + $0x10] sm:$0xff]  }
 0x290   :  { %1714 = vmatprep.subr.bf16.mxu0 %v2146_v0 }
 0x293   :  { %1715 = vmatpush3.bf16.msra.mxu0 %v1866_v2  ;;  %v1897_v2 = vld [vmem:[#allocation14 + $0x18] sm:$0xff]  }
 0x294   :  { %1716 = vmatprep.subr.bf16.mxu0 %v2146_v0 }
 0x297   :  { %1717 = vmatpush3.bf16.msra.mxu0 %v1867_v3  ;;  %v1898_v3 = vld [vmem:[#allocation14 + $0x20] sm:$0xff]  }
 0x298   :  { %1718 = vmatprep.subr.bf16.mxu0 %v2146_v0 }
 0x29b   :  { %1719 = vmatpush3.bf16.msra.mxu0 %v1868_v12 }
 0x29c   :  { %1720 = vmatprep.subr.bf16.mxu0 %v2146_v0 }
 0x29f   :  { %1721 = vmatpush3.bf16.msra.mxu0 %v1869_v13  ;;  %v1900_v13 = vld [vmem:[#allocation14 + $0x30] sm:$0xff]  }
 0x2a0   :  { %1746 = vmatprep.subr.bf16.mxu0 %v2146_v0 }
 0x355   :  { %v584_v5 = vpop.f32.mrb[4].mxu0 }
 0x356   :  { %v585_v6 = vadd.f32 %v1473_v4, %v584_v5  ;;  %v1684_v7 = vpop.f32.mrb[5].mxu0  ;;  %v1899_v4 = vld [vmem:[#allocation14 + $0x28] sm:$0xff]   ;;  %v1509_v5 = vld [vmem:[%s2651_s14] ss:$0 sm:$0xff] }
 0x357   :  { %v587_v8 = vpop.f32.mrb[6].mxu0 }
 0x358   :  { %v590_v9 = vmax.f32 %v585_v6, 0.0  ;;  %v1685_v10 = vpop.f32.mrb[7].mxu0 }
 0x35a   :  { %v591_v11 = vpack.c.bf16 %v590_v9, %v590_v9 }
 0x35c   :  { %1703 = vmatmul.mubr.bf16.vlgmr.msra.gmra.mrb[4].mxu1 %v591_v11 }
 0x35d   :  { %1742 = vmatprep.mubr.msk.bf16.mxu1 %vm2147_vm0, %v2146_v0  ;;  %1727 = vmatpush3.bf16.msra.mxu1 %v1870_v14  ;;  %v1901_v14 = vld [vmem:[#allocation14 + $0x38] sm:$0xff]  }
 0x35e   :  { %1728 = vmatprep.subr.bf16.mxu1 %v2146_v0 }
 0x361   :  { %1729 = vmatpush3.bf16.msra.mxu1 %v1871_v15  ;;  %v1902_v15 = vld [vmem:[%s2656_s19] ss:$8 sps:$4 sm:$0xff]  }
 0x362   :  { %1730 = vmatprep.subr.bf16.mxu1 %v2146_v0 }
 0x365   :  { %1731 = vmatpush3.bf16.msra.mxu1 %v1872_v16  ;;  %v1904_v16 = vld [vmem:[%s2656_s19 + $0x4] ss:$8 sps:$4 sm:$0xff]  }
 0x366   :  { %1732 = vmatprep.subr.bf16.mxu1 %v2146_v0 }
 0x369   :  { %1733 = vmatpush3.bf16.msra.mxu1 %v1873_v17  ;;  %v1907_v17 = vld [vmem:[%s2656_s19 + $0x14] ss:$8 sps:$4 sm:$0xff]  }
 0x36a   :  { %1734 = vmatprep.subr.bf16.mxu1 %v2146_v0 }
 0x36d   :  { %1735 = vmatpush3.bf16.msra.mxu1 %v1874_v18  ;;  %v1910_v18 = vld [vmem:[%s2656_s19 + $0x24] ss:$8 sps:$4 sm:$0xff]  }
 0x36e   :  { %1736 = vmatprep.subr.bf16.mxu1 %v2146_v0 }
 0x371   :  { %1737 = vmatpush3.bf16.msra.mxu1 %v1875_v19  ;;  %v1908_v19 = vld [vmem:[%s2656_s19 + $0x20] ss:$8 sps:$4 sm:$0xff]  }
 0x372   :  { %1738 = vmatprep.subr.bf16.mxu1 %v2146_v0 }
 0x375   :  { %1739 = vmatpush3.bf16.msra.mxu1 %v1876_v28  ;;  %v1518_v28 = vld [vmem:[%s2653_s16] ss:$0 sm:$0xff] }
 0x376   :  { %1740 = vmatprep.subr.bf16.mxu1 %v2146_v0 }
 0x379   :  { %1741 = vmatpush3.bf16.msra.mxu1 %v1877_v29 }
 0x37a   :  { %1766 = vmatprep.subr.bf16.mxu1 %v2146_v0 }
 0x42f   :  { %v697_v21 = vpop.f32.mrb[4].mxu1 }
 0x430   :  { %v698_v22 = vadd.f32 %v1482_v20, %v697_v21  ;;  %v1704_v23 = vpop.f32.mrb[5].mxu1  ;;  %v1913_v20 = vld [vmem:[%s2656_s19 + $0x34] ss:$8 sps:$4 sm:$0xff]   ;;  %v1911_v21 = vld [vmem:[%s2656_s19 + $0x30] ss:$8 sps:$4 sm:$0xff]  }
 0x431   :  { %v700_v24 = vpop.f32.mrb[6].mxu1  ;;  %v1914_v23 = vld [vmem:[%s2656_s19 + $0x40] ss:$8 sps:$4 sm:$0xff]  }
 0x432   :  { %v703_v25 = vmax.f32 %v698_v22, 0.0  ;;  %v1705_v26 = vpop.f32.mrb[7].mxu1  ;;  %v1916_v22 = vld [vmem:[%s2656_s19 + $0x44] ss:$8 sps:$4 sm:$0xff]   ;;  %v1919_v24 = vld [vmem:[%s2656_s19 + $0x54] ss:$8 sps:$4 sm:$0xff]  }
 0x433   :  { %v1922_v26 = vld [vmem:[%s2656_s19 + $0x64] ss:$8 sps:$4 sm:$0xff]  }
 0x434   :  { %v704_v27 = vpack.c.bf16 %v703_v25, %v703_v25  ;;  %v1917_v25 = vld [vmem:[%s2656_s19 + $0x50] ss:$8 sps:$4 sm:$0xff]  }
 0x436   :  { %1723 = vmatmul.mubr.bf16.vlgmr.msra.gmra.mrb[8].mxu0 %v704_v27  ;;  %v1920_v27 = vld [vmem:[%s2656_s19 + $0x60] ss:$8 sps:$4 sm:$0xff]  }
 0x437   :  { %1762 = vmatprep.mubr.msk.bf16.mxu0 %vm2147_vm0, %v2146_v0  ;;  %1747 = vmatpush3.bf16.msra.mxu0 %v1878_v30 }
 0x438   :  { %1748 = vmatprep.subr.bf16.mxu0 %v2146_v0 }
 0x43b   :  { %1749 = vmatpush3.bf16.msra.mxu0 %v1879_v31 }
 0x43c   :  { %1750 = vmatprep.subr.bf16.mxu0 %v2146_v0 }
 0x43f   :  { %1751 = vmatpush3.bf16.msra.mxu0 %v1880_v32 }
 0x440   :  { %1752 = vmatprep.subr.bf16.mxu0 %v2146_v0 }
 0x443   :  { %1753 = vmatpush3.bf16.msra.mxu0 %v1881_v33 }
 0x444   :  { %1754 = vmatprep.subr.bf16.mxu0 %v2146_v0 }
 0x447   :  { %1755 = vmatpush3.bf16.msra.mxu0 %v1882_v34 }
 0x448   :  { %1756 = vmatprep.subr.bf16.mxu0 %v2146_v0 }
 0x44b   :  { %1757 = vmatpush3.bf16.msra.mxu0 %v1883_v35 }
 0x44c   :  { %1758 = vmatprep.subr.bf16.mxu0 %v2146_v0 }
 0x44f   :  { %1759 = vmatpush3.bf16.msra.mxu0 %v1884_v44 }
 0x450   :  { %1760 = vmatprep.subr.bf16.mxu0 %v2146_v0 }
 0x453   :  { %1761 = vmatpush3.bf16.msra.mxu0 %v1885_v45 }
 0x454   :  { %1786 = vmatprep.subr.bf16.mxu0 %v2146_v0 }
 0x509   :  { %v810_v37 = vpop.f32.mrb[8].mxu0 }
 0x50a   :  { %v811_v38 = vadd.f32 %v1491_v36, %v810_v37  ;;  %v1724_v39 = vpop.f32.mrb[9].mxu0  ;;  %v1925_v36 = vld [vmem:[%s2656_s19 + $0x74] ss:$8 sps:$4 sm:$0xff]   ;;  %v1923_v37 = vld [vmem:[%s2656_s19 + $0x70] ss:$8 sps:$4 sm:$0xff]  }
 0x50b   :  { %v813_v40 = vpop.f32.mrb[10].mxu0  ;;  %v1527_v39 = vld [vmem:[%s2655_s18] ss:$0 sm:$0xff]  ;;  %s1428_s18 = sshll.u32 %s2149_s9, 4  ;;  %s1429_s18 = int_to_ptr.vmem [resolvable:$true] %s1428_s18 }
 0x50c   :  { %v816_v41 = vmax.f32 %v811_v38, 0.0  ;;  %v1725_v42 = vpop.f32.mrb[11].mxu0  ;;  %v2148_v38 = vmov 0   ;;  %s2102_s5 = scalar_lea.vmem %s1429_s18, 256  ;;  %p2107_p9 = scmp.lt.s32.totalorder %s1429_s18, %s1429_s18 }
 0x50d   :  { %p2103_p8 = scmp.ne.s32.totalorder %s1429_s18, %s2102_s5  ;;  %p2108_p10 = scmp.lt.s32.totalorder %s2102_s5, %s2102_s5 }
 0x50e   :  { %v817_v43 = vpack.c.bf16 %v816_v41, %v816_v41 }
 0x50f   :  { %p2109_p11 = por %p2108_p10, %p2107_p9 }
 0x510   :  { %818 = vst [vmem:[%s2659_s22] sm:$0xf] %v817_v43  ;;  %1743 = vmatmul.mubr.bf16.vlgmr.msra.gmra.mrb[8].mxu1 %v817_v43 }
 0x511   :  { %1782 = vmatprep.mubr.msk.bf16.mxu1 %vm2147_vm0, %v2146_v0  ;;  %1767 = vmatpush3.bf16.msra.mxu1 %v1886_v46  ;;  %p2110_p12 = pnand %p2109_p11, %p2103_p8 }
 0x512   :  { %1768 = vmatprep.subr.bf16.mxu1 %v2146_v0 }
 0x515   :  { %1769 = vmatpush3.bf16.msra.mxu1 %v1887_v47  ;;  %v1289_v47 = vlaneseq }
 0x516   :  { %1770 = vmatprep.subr.bf16.mxu1 %v2146_v0 }
 0x519   :  { %1771 = vmatpush3.bf16.msra.mxu1 %v1888_v48  ;;  %v1290_v48 = vshrl.u32 %v1289_v47, 7 }
 0x51a   :  { %1772 = vmatprep.subr.bf16.mxu1 %v2146_v0 }
 0x51d   :  { %1773 = vmatpush3.bf16.msra.mxu1 %v1889_v49  ;;  %v1291_v49 = vsub.s32 0, %v1290_v48 }
 0x51e   :  { %1774 = vmatprep.subr.bf16.mxu1 %v2146_v0 }
 0x521   :  { %1775 = vmatpush3.bf16.msra.mxu1 %v1890_v50  ;;  %v1287_v50 = vld [vmem:[%s2657_s20] sm:$0x3] }
 0x522   :  { %1776 = vmatprep.subr.bf16.mxu1 %v2146_v0 }
 0x525   :  { %1777 = vmatpush3.bf16.msra.mxu1 %v1891_v51  ;;  %v1295_v51 = vsub.s32 1, %v1290_v48 }
 0x526   :  { %1778 = vmatprep.subr.bf16.mxu1 %v2146_v0 }
 0x529   :  { %1779 = vmatpush3.bf16.msra.mxu1 %v1892_v60 }
 0x52a   :  { %1780 = vmatprep.subr.bf16.mxu1 %v2146_v0 }
 0x52d   :  { %1781 = vmatpush3.bf16.msra.mxu1 %v1893_v61 }
 0x52e   :  { %1379 = vmatprep.subr.bf16.mxu1 %v1904_v16 }
 0x5e3   :  { %v924_v53 = vpop.f32.mrb[8].mxu1 }
 0x5e4   :  { %v925_v54 = vadd.f32 %v1500_v52, %v924_v53  ;;  %v1744_v55 = vpop.f32.mrb[9].mxu1  ;;  %v1292_v52 = vrot.slane %v1287_v50, %v1291_v49  ;;  %v1296_v53 = vrot.slane %v1287_v50, %v1295_v51 }
 0x5e5   :  { %v927_v56 = vpop.f32.mrb[10].mxu1 }
 0x5e6   :  { %v930_v57 = vmax.f32 %v925_v54, 0.0  ;;  %v1745_v58 = vpop.f32.mrb[11].mxu1 }
 0x5e8   :  { %v931_v59 = vpack.c.bf16 %v930_v57, %v930_v57 }
 0x5ea   :  { %1763 = vmatmul.mubr.bf16.vlgmr.msra.gmra.mrb[12].mxu0 %v931_v59 }
 0x5eb   :  { %1802 = vmatprep.mubr.msk.bf16.mxu0 %vm2147_vm0, %v2146_v0  ;;  %1787 = vmatpush3.bf16.msra.mxu0 %v1894_v62 }
 0x5ec   :  { %1788 = vmatprep.subr.bf16.mxu0 %v2146_v0 }
 0x5ef   :  { %1789 = vmatpush3.bf16.msra.mxu0 %v1895_v63 }
 0x5f0   :  { %1790 = vmatprep.subr.bf16.mxu0 %v2146_v0 }
 0x5f3   :  { %1791 = vmatpush3.bf16.msra.mxu0 %v1896_v1 }
 0x5f4   :  { %1792 = vmatprep.subr.bf16.mxu0 %v2146_v0 }
 0x5f7   :  { %1793 = vmatpush3.bf16.msra.mxu0 %v1897_v2 }
 0x5f8   :  { %1794 = vmatprep.subr.bf16.mxu0 %v2146_v0 }
 0x5fb   :  { %1795 = vmatpush3.bf16.msra.mxu0 %v1898_v3 }
 0x5fc   :  { %1796 = vmatprep.subr.bf16.mxu0 %v2146_v0 }
 0x5ff   :  { %1797 = vmatpush3.bf16.msra.mxu0 %v1899_v4 }
 0x600   :  { %1798 = vmatprep.subr.bf16.mxu0 %v2146_v0 }
 0x603   :  { %1799 = vmatpush3.bf16.msra.mxu0 %v1900_v13 }
 0x604   :  { %1800 = vmatprep.subr.bf16.mxu0 %v2146_v0  ;;  %v1905_v0 = vld [vmem:[%s2656_s19 + $0x10] ss:$8 sps:$4 sm:$0xff]  }
 0x607   :  { %1801 = vmatpush3.bf16.msra.mxu0 %v1901_v14 }
 0x6bd   :  { %v1037_v6 = vpop.f32.mrb[12].mxu0 }
 0x6be   :  { %v1038_v7 = vadd.f32 %v1509_v5, %v1037_v6  ;;  %v1764_v8 = vpop.f32.mrb[13].mxu0 }
 0x6bf   :  { %v1040_v9 = vpop.f32.mrb[14].mxu0 }
 0x6c0   :  { %v1043_v10 = vmax.f32 %v1038_v7, 0.0  ;;  %v1765_v11 = vpop.f32.mrb[15].mxu0 }
 0x6c2   :  { %v1044_v12 = vpack.c.bf16 %v1043_v10, %v1043_v10 }
 0x6c4   :  { %1783 = vmatmul.mubr.bf16.vlgmr.msra.gmra.mrb[12].mxu1 %v1044_v12 }
 0x6c5   :  { %1380 = vmatpush1.bf16.msra.mxu1 %v1902_v15  ;;  %1411 = vmatprep.mubr.bf16.mxu1 %v2148_v38 }
 0x6c6   :  { %1381 = vmatprep.subr.bf16.mxu1 %v1907_v17 }
 0x6c9   :  { %1382 = vmatpush1.bf16.msra.mxu1 %v1905_v0 }
 0x6ca   :  { %1383 = vmatprep.subr.bf16.mxu1 %v1910_v18 }
 0x6cd   :  { %1384 = vmatpush1.bf16.msra.mxu1 %v1908_v19 }
 0x6ce   :  { %1385 = vmatprep.subr.bf16.mxu1 %v1913_v20 }
 0x6d1   :  { %1386 = vmatpush1.bf16.msra.mxu1 %v1911_v21 }
 0x6d2   :  { %1387 = vmatprep.subr.bf16.mxu1 %v1916_v22 }
 0x6d5   :  { %1388 = vmatpush1.bf16.msra.mxu1 %v1914_v23 }
 0x6d6   :  { %1389 = vmatprep.subr.bf16.mxu1 %v1919_v24 }
 0x6d9   :  { %1390 = vmatpush1.bf16.msra.mxu1 %v1917_v25 }
 0x6da   :  { %1391 = vmatprep.subr.bf16.mxu1 %v1922_v26 }
 0x6dd   :  { %1392 = vmatpush1.bf16.msra.mxu1 %v1920_v27 }
 0x6de   :  { %1393 = vmatprep.subr.bf16.mxu1 %v1925_v36 }
 0x6e1   :  { %1394 = vmatpush1.bf16.msra.mxu1 %v1923_v37 }
 0x797   :  { %v1150_v29 = vpop.f32.mrb[12].mxu1 }
 0x798   :  { %v1151_v30 = vadd.f32 %v1518_v28, %v1150_v29  ;;  %v1784_v31 = vpop.f32.mrb[13].mxu1 }
 0x799   :  { %v1153_v32 = vpop.f32.mrb[14].mxu1 }
 0x79a   :  { %v1156_v33 = vmax.f32 %v1151_v30, 0.0  ;;  %v1785_v34 = vpop.f32.mrb[15].mxu1 }
 0x79c   :  { %v1157_v35 = vpack.c.bf16 %v1156_v33, %v1156_v33 }
 0x79e   :  { %1803 = vmatmul.mubr.bf16.vlgmr.msra.gmra.mrb[16].mxu0 %v1157_v35 }
 0x871   :  { %v1263_v40 = vpop.f32.mrb[16].mxu0 }
 0x872   :  { %v1264_v41 = vadd.f32 %v1527_v39, %v1263_v40  ;;  %v1804_v42 = vpop.f32.mrb[17].mxu0 }
 0x873   :  { %v1266_v43 = vpop.f32.mrb[18].mxu0 }
 0x874   :  { %v1269_v44 = vmax.f32 %v1264_v41, 0.0  ;;  %v1805_v45 = vpop.f32.mrb[19].mxu0 }
 0x876   :  { %v1270_v46 = vpack.c.bf16 %v1269_v44, %v1269_v44 }
 0x878   :  { %1412 = vmatmul.mubr.bf16.vlgmr.msra.gmra.mrb[16].mxu1 %v1270_v46 }
 0x94b   :  { %v1413_v54 = vpop.f32.mrb[16].mxu1 }
 0x94c   :  { %v1414_v55 = vadd.f32 %v1413_v54, %v1292_v52  ;;  %v1415_v56 = vpop.f32.mrb[17].mxu1 }
 0x94d   :  { %v1416_v57 = vadd.f32 %v1415_v56, %v1296_v53  ;;  %v1417_v58 = vpop.f32.mrb[18].mxu1 }
 0x94e   :  { %1420 = vst [vmem:[#allocation16] sm:$0xff] %v1414_v55  ;;  %v1418_v59 = vpop.f32.mrb[19].mxu1 }
 0x94f   :  { %1421 = vst [vmem:[#allocation16 + $0x8] sm:$0xff] %v1416_v57 }
 0x950   :  { %2113 = shalt.err (!%p2110_p12)
}
 0x951   :  { %s2679_s21 = sld [smem:[#allocation30_spill]] }
 0x957   :  { %s2114_s25 = scalar_lea.hbm %s2679_s21, 256 }
 0x958   :  { %p2115_p13 = scmp.ne.s32.totalorder %s2679_s21, %s2114_s25  ;;  %p2118_p0 = scmp.lt.u32.totalorder %s2114_s25, %s2679_s21 }
 0x95a   :  { %p2120_p1 = pnand %p2118_p0, %p2115_p13 }
 0x95c   :  { %2123 = shalt.err (!%p2120_p1)
}
 0x95d   :  { %1431 = dma.vmem_to_hbm [thread:$0]  %s1429_s18, 256, %s2679_s21, [#allocation4]  }
 0x95e   :  { %2134 = dma.done.wait [#allocation4], 256  }
 0x95f   :  { %2135 = vsyncadd [#allocation4], 4294967040 }
 0x960   :  { %1439 = vsyncpa [#allocation3], 1 }
 0x961   :  { %1440 = vsyncpa [#allocation6], 1 }
 0x962   :  { %1441 = vsyncpa [#allocation9], 1 }
 0x963   :  { %1442 = vsyncpa [#allocation12], 1 }
 0x964   :  { %1443 = vsyncpa [#allocation15], 1 }
 0x965   :  { %1444 = vsyncpa [#allocation4], 1 }

</bundles_post_ra>
